<compile_context>
chip_gen: v6e
topology: v6e:2x2x1
jax: 0.10.0
libtpu: 0.0.40
codegen_flags: <defaults>
</compile_context>

<pallas_src>
import functools

import jax
import jax.numpy as jnp
from jax.experimental import pallas as pl
from jax.experimental.pallas import tpu as pltpu

EPS = 1e-5


def _round_up(v, m):
    return ((v + m - 1) // m) * m


def prenorm_kernel(inv_d, x_ref, g_ref, b_ref, w_ref, wb_ref, o_ref, y_ref):
    """Grid = (row_blocks, col_blocks), column axis innermost ('arbitrary').

    LayerNorm (f32, VPU) is computed once per row tile at j == 0 into the
    y_ref scratch (already cast to the weight dtype); every column block then
    only runs the (tm, D) x (D, tn) MXU matmul + bias.
    """
    @pl.when(pl.program_id(1) == 0)
    def _():
        x = x_ref[...].astype(jnp.float32)
        # One-pass mean / variance (biased, eps inside rsqrt == nn.LayerNorm).
        mean = jnp.sum(x, axis=-1, keepdims=True) * inv_d
        ex2 = jnp.sum(x * x, axis=-1, keepdims=True) * inv_d
        var = jnp.maximum(ex2 - mean * mean, 0.0)
        xn = (x - mean) * jax.lax.rsqrt(var + EPS)
        y = xn * g_ref[...].astype(jnp.float32) + b_ref[...].astype(jnp.float32)
        y_ref[...] = y.astype(y_ref.dtype)

    out = jnp.dot(y_ref[...], w_ref[...], preferred_element_type=jnp.float32)
    out = out + wb_ref[...].astype(jnp.float32)
    o_ref[...] = out.astype(o_ref.dtype)


def prepare_prenorm_params(gamma, beta, w, wb, *, weight_dtype=None):
    """One-time parameter prep: do this at model init, OUTSIDE the hot path.

    gamma/beta: (D,) LayerNorm affine. w: (D_out, D_in) torch-style Linear
    weight. wb: (D_out,) Linear bias. Transposes w, optionally casts it to
    `weight_dtype` (e.g. bf16), and pads D_out up to a multiple of 128 so the
    kernel's output stores are lane-dense.
    """
    D_out, D_in = w.shape
    d_out_pad = _round_up(D_out, 128)

    wT = jnp.asarray(w).T  # (D_in, D_out): kernel computes y @ W^T
    if weight_dtype is not None:
        wT = wT.astype(weight_dtype)
    bias = jnp.asarray(wb).astype(jnp.float32)
    if d_out_pad != D_out:
        wT = jnp.pad(wT, ((0, 0), (0, d_out_pad - D_out)))
        bias = jnp.pad(bias, (0, d_out_pad - D_out))

    return dict(
        gamma=jnp.asarray(gamma).reshape(1, D_in),
        beta=jnp.asarray(beta).reshape(1, D_in),
        wT=wT,                              # (D_in, d_out_pad)
        bias=bias.reshape(1, d_out_pad),
        d_out=D_out,
    )


def prenorm(x, params, *, tm=512, tn=512, vmem_limit_bytes=None):
    """x: (B, S, D). params: output of prepare_prenorm_params."""
    B, S, D = x.shape
    gamma, beta, wT, bias = params["gamma"], params["beta"], params["wT"], params["bias"]
    d_out = params["d_out"]
    D_in, d_out_pad = wT.shape
    assert D_in == D, "Linear input dim must match LayerNorm dim"
    rows = B * S

    # ---- row tile: multiple of 8, clamped for small inputs; keep >= 2 grid
    # steps when rows permit so the 'parallel' axis can shard across 2 TCs.
    rows_aligned = _round_up(rows, 8)
    tm = min(tm, rows_aligned)
    if rows_aligned >= 16:
        tm = min(tm, _round_up(pl.cdiv(rows_aligned, 2), 8))
    tm = _round_up(tm, 8)
    rows_padded = pl.cdiv(rows, tm) * tm
    n_row = rows_padded // tm

    # ---- column tile: lane-dense (multiple of 128) exact divisor of d_out_pad
    # so no output store is masked and only a (D, tn) W^T slab is resident.
    tn = min(tn, d_out_pad)
    tn = max(128, (tn // 128) * 128)
    while d_out_pad % tn != 0:
        tn -= 128
    n_col = d_out_pad // tn

    x_itemsize = jnp.dtype(x.dtype).itemsize
    w_itemsize = jnp.dtype(wT.dtype).itemsize

    # Pipeline depths: grid-invariant operands single-buffered; a 3rd x buffer
    # only for small-D shapes where per-step compute is short (and only if the
    # row grid is long enough for it to matter).
    x_bufs = 3 if (D <= 256 and n_row >= 3) else 2
    w_bufs = 1 if n_col == 1 else 2

    if vmem_limit_bytes is None:
        footprint = (x_bufs * tm * D * x_itemsize          # x tiles
                     + w_bufs * D * tn * w_itemsize        # W^T slab(s)
                     + 2 * tm * tn * x_itemsize            # output tiles
                     + tm * D * w_itemsize                 # LN scratch
                     + 2 * D * 4 + 2 * tn * 4)             # gamma/beta/bias
        try:
            cap = pltpu.get_tpu_info().vmem_capacity_bytes * 3 // 4
        except Exception:
            cap = 48 * 1024 * 1024  # safe even for v7x's 64 MiB/TC
        vmem_limit_bytes = min(max(footprint + 4 * 1024 * 1024,
                                   32 * 1024 * 1024), cap)

    x2 = x.reshape(rows, D)
    if rows_padded != rows:
        # Padded rows are zeros -> xn = 0, y = beta: finite, sliced off below.
        x2 = jnp.pad(x2, ((0, rows_padded - rows), (0, 0)))

    cost = pl.CostEstimate(
        flops=2 * rows_padded * D * d_out_pad,
        transcendentals=rows_padded,  # one rsqrt per row
        bytes_accessed=(rows_padded * D * x_itemsize
                        + rows_padded * d_out_pad * x_itemsize
                        + D * d_out_pad * w_itemsize
                        + (2 * D + d_out_pad) * 4),
    )

    kernel = functools.partial(prenorm_kernel, 1.0 / D)

    out = pl.pallas_call(
        kernel,
        out_shape=jax.ShapeDtypeStruct((rows_padded, d_out_pad), x.dtype),
        grid_spec=pltpu.PrefetchScalarGridSpec(
            num_scalar_prefetch=0,
            grid=(n_row, n_col),
            in_specs=[
                pl.BlockSpec((tm, D), lambda i, j: (i, 0),
                             pipeline_mode=pl.Buffered(x_bufs)),      # x rows
                pl.BlockSpec((1, D), lambda i, j: (0, 0),
                             pipeline_mode=pl.Buffered(1)),           # gamma
                pl.BlockSpec((1, D), lambda i, j: (0, 0),
                             pipeline_mode=pl.Buffered(1)),           # beta
                pl.BlockSpec((D, tn), lambda i, j: (0, j),
                             pipeline_mode=pl.Buffered(w_bufs)),      # W^T slab
                pl.BlockSpec((1, tn), lambda i, j: (0, j),
                             pipeline_mode=pl.Buffered(w_bufs)),      # bias
            ],
            out_specs=pl.BlockSpec((tm, tn), lambda i, j: (i, j)),
            scratch_shapes=[pltpu.VMEM((tm, D), wT.dtype)],           # LN scratch
        ),
        compiler_params=pltpu.CompilerParams(
            dimension_semantics=("parallel", "arbitrary"),
            vmem_limit_bytes=int(vmem_limit_bytes)),
        cost_estimate=cost,
    )(x2, gamma, beta, wT, bias)

    out = out[:rows, :d_out]
    return out.reshape(B, S, d_out)


def prenorm_ref(x, gamma, beta, w, wb):
    xf = x.astype(jnp.float32)
    mean = jnp.mean(xf, axis=-1, keepdims=True)
    var = jnp.mean((xf - mean) ** 2, axis=-1, keepdims=True)
    y = (xf - mean) * jax.lax.rsqrt(var + EPS) * gamma.astype(jnp.float32) \
        + beta.astype(jnp.float32)
    out = y @ w.astype(jnp.float32).T + wb.astype(jnp.float32)
    return out.astype(x.dtype)


if __name__ == "__main__":
    key = jax.random.PRNGKey(0)
    kx, kw, kb, kg, kbe, kx2 = jax.random.split(key, 6)

    # Shapes consistent with the module: (B, S, D) = (2, 8, 32), fn = Linear(32, 32).
    B, S, D = 2, 8, 32
    D_out = 32
    x = jax.random.normal(kx, (B, S, D), dtype=jnp.float32)
    gamma = 1.0 + 0.1 * jax.random.normal(kg, (D,), dtype=jnp.float32)
    beta = 0.05 * jax.random.normal(kbe, (D,), dtype=jnp.float32)
    w = jax.random.normal(kw, (D_out, D), dtype=jnp.float32) * 0.05
    wb = jax.random.normal(kb, (D_out,), dtype=jnp.float32) * 0.05

    # One-time parameter prep (transpose + lane padding) outside the hot path.
    params_f32 = prepare_prenorm_params(gamma, beta, w, wb)

    # Case 1: f32 weights, exact-ish comparison.
    out = prenorm(x, params_f32)
    jax.block_until_ready(out)
    ref = prenorm_ref(x, gamma, beta, w, wb)
    assert out.shape == (B, S, D_out)
    assert jnp.allclose(out, ref, atol=1e-4, rtol=1e-4), "mismatch (case 1: f32 weights)"

    # Case 2: ragged row count (B*S not a tile multiple) exercises row padding.
    B2, S2 = 3, 7
    x2 = jax.random.normal(kx2, (B2, S2, D), dtype=jnp.float32)
    out2 = prenorm(x2, params_f32)
    jax.block_until_ready(out2)
    ref2 = prenorm_ref(x2, gamma, beta, w, wb)
    assert jnp.allclose(out2, ref2, atol=1e-4, rtol=1e-4), "mismatch (case 2: ragged rows)"

    # Case 3: bf16 weights (full-rate MXU, half the resident W^T), f32 accumulation.
    params_bf16 = prepare_prenorm_params(gamma, beta, w, wb, weight_dtype=jnp.bfloat16)
    out3 = prenorm(x, params_bf16)
    jax.block_until_ready(out3)
    assert jnp.allclose(out3, ref, atol=5e-2, rtol=5e-2), "mismatch (case 3: bf16 weights)"

    print("KERNEL_OK")
</pallas_src>

<mosaic_0001>
module attributes {stable_mosaic.version = 11 : i64} {
  func.func @prenorm_kernel(%arg0: i32, %arg1: i32, %arg2: memref<8x32xf32, #tpu.memory_space<vmem>>, %arg3: memref<1x32xf32, #tpu.memory_space<vmem>>, %arg4: memref<1x32xf32, #tpu.memory_space<vmem>>, %arg5: memref<32x128xf32, #tpu.memory_space<vmem>>, %arg6: memref<1x128xf32, #tpu.memory_space<vmem>>, %arg7: memref<8x128xf32, #tpu.memory_space<vmem>>, %arg8: memref<8x32xf32, #tpu.memory_space<vmem>>) attributes {dimension_semantics = [#tpu.dimension_semantics<parallel>, #tpu.dimension_semantics<arbitrary>], iteration_bounds = array<i64: 2, 1>, scalar_prefetch = 0 : i64, scratch_operands = 1 : i64, tpu.core_type = #tpu.core_type<tc>, window_params = [{pipeline_mode = #tpu.pipeline_mode<double_buffered>, transform_indices = @transform_0, window_bounds = array<i64: 8, 32>}, {pipeline_mode = #tpu.pipeline_mode<synchronous>, transform_indices = @transform_1, window_bounds = array<i64: 1, 32>}, {pipeline_mode = #tpu.pipeline_mode<synchronous>, transform_indices = @transform_2, window_bounds = array<i64: 1, 32>}, {pipeline_mode = #tpu.pipeline_mode<synchronous>, transform_indices = @transform_3, window_bounds = array<i64: 32, 128>}, {pipeline_mode = #tpu.pipeline_mode<synchronous>, transform_indices = @transform_4, window_bounds = array<i64: 1, 128>}, {transform_indices = @transform_5, window_bounds = array<i64: 8, 128>}]} {
    %c0_i32 = arith.constant 0 : i32
    %0 = arith.cmpi eq, %arg1, %c0_i32 : i32
    %1 = arith.extui %0 : i1 to i32
    %c0_i32_0 = arith.constant 0 : i32
    %2 = arith.cmpi ne, %1, %c0_i32_0 : i32
    scf.if %2 {
      %c0_8 = arith.constant 0 : index
      %c0_9 = arith.constant 0 : index
      %10 = vector.load %arg2[%c0_8, %c0_9] : memref<8x32xf32, #tpu.memory_space<vmem>>, vector<8x32xf32>
      %cst_10 = arith.constant dense<0.000000e+00> : vector<8xf32>
      %11 = vector.multi_reduction <add>, %10, %cst_10 [1] : vector<8x32xf32> to vector<8xf32>
      %12 = vector.shape_cast %11 : vector<8xf32> to vector<8x1xf32>
      %cst_11 = arith.constant 3.125000e-02 : f32
      %13 = vector.broadcast %cst_11 : f32 to vector<8x1xf32>
      %14 = arith.mulf %12, %13 : vector<8x1xf32>
      %15 = arith.mulf %10, %10 : vector<8x32xf32>
      %cst_12 = arith.constant dense<0.000000e+00> : vector<8xf32>
      %16 = vector.multi_reduction <add>, %15, %cst_12 [1] : vector<8x32xf32> to vector<8xf32>
      %17 = vector.shape_cast %16 : vector<8xf32> to vector<8x1xf32>
      %cst_13 = arith.constant 3.125000e-02 : f32
      %18 = vector.broadcast %cst_13 : f32 to vector<8x1xf32>
      %19 = arith.mulf %17, %18 : vector<8x1xf32>
      %20 = arith.mulf %14, %14 : vector<8x1xf32>
      %21 = arith.subf %19, %20 : vector<8x1xf32>
      %cst_14 = arith.constant 0.000000e+00 : f32
      %22 = vector.broadcast %cst_14 : f32 to vector<8x1xf32>
      %23 = arith.maximumf %21, %22 : vector<8x1xf32>
      %24 = vector.broadcast %14 : vector<8x1xf32> to vector<8x32xf32>
      %25 = arith.subf %10, %24 : vector<8x32xf32>
      %cst_15 = arith.constant 9.99999974E-6 : f32
      %26 = vector.broadcast %cst_15 : f32 to vector<8x1xf32>
      %27 = arith.addf %23, %26 : vector<8x1xf32>
      %28 = math.rsqrt %27 : vector<8x1xf32>
      %29 = vector.broadcast %28 : vector<8x1xf32> to vector<8x32xf32>
      %30 = arith.mulf %25, %29 : vector<8x32xf32>
      %c0_16 = arith.constant 0 : index
      %c0_17 = arith.constant 0 : index
      %31 = vector.load %arg3[%c0_16, %c0_17] : memref<1x32xf32, #tpu.memory_space<vmem>>, vector<1x32xf32>
      %32 = vector.broadcast %31 : vector<1x32xf32> to vector<8x32xf32>
      %33 = arith.mulf %30, %32 : vector<8x32xf32>
      %c0_18 = arith.constant 0 : index
      %c0_19 = arith.constant 0 : index
      %34 = vector.load %arg4[%c0_18, %c0_19] : memref<1x32xf32, #tpu.memory_space<vmem>>, vector<1x32xf32>
      %35 = vector.broadcast %34 : vector<1x32xf32> to vector<8x32xf32>
      %36 = arith.addf %33, %35 : vector<8x32xf32>
      %c0_20 = arith.constant 0 : index
      %c0_21 = arith.constant 0 : index
      %37 = vector.load %arg8[%c0_20, %c0_21] : memref<8x32xf32, #tpu.memory_space<vmem>>, vector<8x32xf32>
      tpu.vector_store %arg8[%c0_20, %c0_21], %36 {strides = array<i32>} : memref<8x32xf32, #tpu.memory_space<vmem>>, vector<8x32xf32>,
    } else {
    }
    %c0 = arith.constant 0 : index
    %c0_1 = arith.constant 0 : index
    %3 = vector.load %arg8[%c0, %c0_1] : memref<8x32xf32, #tpu.memory_space<vmem>>, vector<8x32xf32>
    %c0_2 = arith.constant 0 : index
    %c0_3 = arith.constant 0 : index
    %4 = vector.load %arg5[%c0_2, %c0_3] : memref<32x128xf32, #tpu.memory_space<vmem>>, vector<32x128xf32>
    %cst = arith.constant dense<0.000000e+00> : vector<8x128xf32>
    %5 = tpu.matmul %3, %4, %cst {dimension_numbers = #tpu.dot_dimension_numbers<[1], [0], [0], [1], [0, 0, 1, 1], [], []>} : vector<8x32xf32>, vector<32x128xf32>, vector<8x128xf32> -> vector<8x128xf32>
    %c0_4 = arith.constant 0 : index
    %c0_5 = arith.constant 0 : index
    %6 = vector.load %arg6[%c0_4, %c0_5] : memref<1x128xf32, #tpu.memory_space<vmem>>, vector<1x128xf32>
    %7 = vector.broadcast %6 : vector<1x128xf32> to vector<8x128xf32>
    %8 = arith.addf %5, %7 : vector<8x128xf32>
    %c0_6 = arith.constant 0 : index
    %c0_7 = arith.constant 0 : index
    %9 = vector.load %arg7[%c0_6, %c0_7] : memref<8x128xf32, #tpu.memory_space<vmem>>, vector<8x128xf32>
    tpu.vector_store %arg7[%c0_6, %c0_7], %8 {strides = array<i32>} : memref<8x128xf32, #tpu.memory_space<vmem>>, vector<8x128xf32>,
    return
  }
  func.func @transform_0(%arg0: i32, %arg1: i32) -> (i32, i32) {
    %c0_i32 = arith.constant 0 : i32
    %c0_i32_0 = arith.constant 0 : i32
    return %arg0, %c0_i32 : i32, i32
  }
  func.func @transform_1(%arg0: i32, %arg1: i32) -> (i32, i32) {
    %c0_i32 = arith.constant 0 : i32
    %c0_i32_0 = arith.constant 0 : i32
    %c0_i32_1 = arith.constant 0 : i32
    return %c0_i32, %c0_i32_0 : i32, i32
  }
  func.func @transform_2(%arg0: i32, %arg1: i32) -> (i32, i32) {
    %c0_i32 = arith.constant 0 : i32
    %c0_i32_0 = arith.constant 0 : i32
    %c0_i32_1 = arith.constant 0 : i32
    return %c0_i32, %c0_i32_0 : i32, i32
  }
  func.func @transform_3(%arg0: i32, %arg1: i32) -> (i32, i32) {
    %c0_i32 = arith.constant 0 : i32
    %c0_i32_0 = arith.constant 0 : i32
    return %c0_i32, %arg1 : i32, i32
  }
  func.func @transform_4(%arg0: i32, %arg1: i32) -> (i32, i32) {
    %c0_i32 = arith.constant 0 : i32
    %c0_i32_0 = arith.constant 0 : i32
    return %c0_i32, %arg1 : i32, i32
  }
  func.func @transform_5(%arg0: i32, %arg1: i32) -> (i32, i32) {
    %c0_i32 = arith.constant 0 : i32
    return %arg0, %arg1 : i32, i32
  }
}

</mosaic_0001>

<bundles_post_ra>
// kernel: tpu_custom_call.1
= control target key start
LH: loop header
LB: loop body
LE: loop exit
PB: predicated region body
PF: predicated region fallthrough
CT: control target
= control target key end

     0   :  { %s1016_s0 = inlined_call_operand.hbm [shape: f32[16,32], index: 0, kind: input, shape index: {}]   ;;  %s1017_s1 = inlined_call_operand.vmem [shape: f32[1,32], index: 1, kind: input, shape index: {}]   ;;  %s1018_s2 = inlined_call_operand.vmem [shape: f32[1,32], index: 2, kind: input, shape index: {}]   ;;  %s1019_s3 = inlined_call_operand.hbm [shape: f32[32,128], index: 3, kind: input, shape index: {}]   ;;  %s1020_s4 = inlined_call_operand.vmem [shape: f32[1,128], index: 4, kind: input, shape index: {}]   ;;  %s1021_s5 = inlined_call_operand.hbm [shape: f32[16,128], index: 5, kind: output, shape index: {}]  }
   0x1   :  { %1024 = sst [smem:[#allocation13_spill]] %s1019_s3 }
   0x2   :  { %10 = vsyncpa [#allocation4], 0 }
   0x3   :  { %12 = vsyncpa [#allocation4 + $0x1], 0 }
   0x4   :  { %13 = vsyncpa [#allocation7], 0 }
   0x5   :  { %14 = vsyncpa [#allocation5], 0 }
   0x6   :  { %16 = vsyncpa [#allocation5 + $0x1], 0  ;;  %s826_s18 = smov 0   ;;  %s828_s19 = smov 0  }
   0x7   :  { %s830_s20 = smov 0   ;;  %s832_s21 = smov 0  }
   0x8   :  { %s834_s22 = smov 0   ;;  %s836_s23 = smov 0  }
   0x9 LB: > { %s534_s24 = sadd.s32 4294967295, %s787_s23   ;;  %s535_s25 = sadd.s32 4294967294, %s787_s23   ;;  %s787_s23 = sphi %s836_s23, %s22_s23   ;;  %s783_s22 = sphi %s834_s22, %s1044_s22   ;;  %s779_s21 = sphi %s832_s21, %s1043_s21   ;;  %s775_s20 = sphi %s830_s20, %s1042_s20   ;;  %s771_s19 = sphi %s828_s19, %s1041_s19   ;;  %s767_s18 = sphi %s826_s18, %s1040_s18  }
   0xa   : > { %p54_p0 = scmp.ne.s32.totalorder %s771_s19, %s767_s18  ;;  %p860_p1 = scmp.eq.s32.totalorder %s534_s24, 0 }
   0xb   : > { %p864_p2 = scmp.eq.s32.totalorder %s534_s24, 1  ;;  %p180_p3 = scmp.eq.s32.totalorder %s535_s25, 1 }
   0xc   : > { %p870_p4 = por %p860_p1, %p54_p0  ;;  %p536_p5 = scmp.ge.s32.totalorder %s787_s23, 1 }
   0xd   : > { %p875_p6 = por %p180_p3, %p54_p0  ;;  %p187_p7 = scmp.lt.s32.totalorder %s787_s23, 3 }
   0xe   : > { %s1027_s28 = scalar_select %p870_p4, 1, 0 }
   0xf   : > { %s1028_s29 = scalar_select %p875_p6, 1, 0 }
  0x10   : > { %p880_p8 = pnand %p536_p5, %p187_p7  ;;  %s789_s6 = smov [#allocation6]  }
  0x11   : > { %s207_s7 = sshll.u32 %s789_s6, 4  ;;  %s34_s9 = sadd.s32 1, %s783_s22  ;;  %s208_s7 = int_to_ptr.vmem [resolvable:$true] %s207_s7 }
  0x12   : > { %p578_p9 = pneg %p880_p8  ;;  %s660_s10 = scalar_lea.vmem %s208_s7, 512 }
  0x13   : > { %p661_p13 = scmp.ne.s32.totalorder %s208_s7, %s660_s10  ;;  %p668_p5 = scmp.lt.s32.totalorder %s208_s7, %s208_s7 }
  0x14   : > { %p889_p11 = pnand %p578_p9, %p860_p1  ;;  %p669_p7 = scmp.lt.s32.totalorder %s660_s10, %s660_s10 }
  0x16   : > { %p651_p12 = pneg %p889_p11  ;;  %p670_p6 = por %p669_p7, %p668_p5 }
  0x18   : > { %p663_p0 = pnand %p661_p13, %p651_p12 }
  0x1a   : > { %p664_p3 = pneg %p663_p0 }
  0x1c   : > { %p671_p4 = pnand %p670_p6, %p664_p3 }
  0x1e   : > { %674 = shalt.err (!%p671_p4)
}
  0x1f   : > { %s790_s11 = smov 128   ;;  %s791_s12 = smov 8  }
  0x20   : > { %s1031_s3 = sld [smem:[#allocation13_spill]]  ;;  %p36_p6 = scmp.ge.s32.totalorder %s34_s9, 2 }
  0x21   : > { %s41_s15 = sadd.s32 1, %s775_s20  ;;  %p48_p4 = scmp.ne.s32.totalorder %s775_s20, %s771_s19 }
  0x22   : > { %p49_p9 = scmp.eq.s32.totalorder %s787_s23, 0  ;;  %s1046_s9 = smov (%p36_p6, %s34_s9), 0 }
  0x23   : > { %1032 = sst [smem:[#allocation12_spill]] %s1046_s9  ;;  %p913_p13 = por %p864_p2, %p48_p4 }
  0x24   : > { %p907_p12 = por %p49_p9, %p48_p4  ;;  %s38_s24 = ssub.s32 %s783_s22, %s1046_s9 }
  0x25   : > { %p591_p0 = scmp.lt.s32.totalorder %s787_s23, 2  ;;  %s227_s25 = sand.u32 1, %s775_s20  }
  0x26   : > { %581 = dma.hbm_to_vmem [thread:$0]  (!%p889_p11), %s1031_s3, 512, %s208_s7, [#allocation7], %s790_s11, %s790_s11, %s791_s12  }
  0x27   : > { %p39_p11 = scmp.eq.s32.totalorder %s38_s24, 0  ;;  %s540_s6 = sshll.u32 %s227_s25, 3 }
  0x28   : > { %s541_s8 = sshll.u32 %s783_s22, 7  ;;  %s231_s13 = scalar_lea.vmem [#allocation3], %s540_s6 }
  0x29   : > { %s922_s7 = scalar_select %p39_p11, %s775_s20, %s41_s15  }
  0x2a   : > { %s236_s12 = scalar_lea.hbm %s1016_s0, %s541_s8  ;;  %s238_s14 = sshll.u32 %s231_s13, 4  ;;  %s239_s14 = int_to_ptr.vmem [resolvable:$true] %s238_s14 }
  0x2b   : > { %p930_p2 = pnand %p591_p0, %p907_p12  ;;  %s228_s3 = scalar_lea.sflag [#allocation4], %s227_s25 }
  0x2c   : > { %s688_s24 = scalar_lea.vmem %s239_s14, 128  ;;  %s792_s15 = smov [#allocation3]  }
  0x2d   : > { %p677_p3 = pneg %p930_p2  ;;  %p689_p5 = scmp.ne.s32.totalorder %s239_s14, %s688_s24 }
  0x2e   : > { %s693_s9 = sshll.u32 %s792_s15, 4  ;;  %s694_s9 = int_to_ptr.vmem [resolvable:$false] %s693_s9 }
  0x2f   : > { %p691_p7 = pnand %p689_p5, %p677_p3  ;;  %s695_s8 = scalar_lea.vmem %s694_s9, 256 }
  0x30   : > { %p696_p4 = scmp.lt.s32.totalorder %s239_s14, %s694_s9  ;;  %p697_p9 = scmp.lt.s32.totalorder %s695_s8, %s688_s24 }
  0x31   : > { %p692_p6 = pneg %p691_p7 }
  0x32   : > { %p698_p11 = por %p697_p9, %p696_p4 }
  0x34   : > { %p699_p10 = pnand %p698_p11, %p692_p6 }
  0x36   : > { %702 = shalt.err (!%p699_p10)
}
  0x37   : > { %585 = dma.hbm_to_vmem [thread:$0]  (!%p930_p2), %s236_s12, 128, %s239_s14, %s228_s3  }
  0x38   : > { %247 = sbr.rel (%p880_p8) target bundleno = 452 (0x1c4), region = 40  ;;  %s941_s16 = sand.u32 (!%p880_p8), 1, %s771_s19  }
  0x39   : > { %s543_s25 = sshll.u32 (!%p880_p8), %s941_s16, 3  ;;  %s250_s6 = scalar_lea.sflag (!%p880_p8), [#allocation4], %s941_s16 }
  0x3a   : > { %s253_s9 = scalar_lea.vmem (!%p880_p8), [#allocation3], %s543_s25  ;;  %p1036_p12 = scmp.ne.s32.totalorder (!%p880_p8), %s1027_s28, 0 }
  0x3d   : > { %754 = dma.done.wait (%p1036_p12), %s250_s6, 128  }
  0x3e   : > { %756 = vsyncadd (%p1036_p12), %s250_s6, 4294967168 }
  0x3f   : > { %758 = dma.done.wait (%p860_p1), [#allocation7], 512  }
  0x40   : > { %760 = vsyncadd (%p860_p1), [#allocation7], 4294966784  ;;  %vm295_vm0 = vcmask 261120   ;;  %v294_v0 = vld [vmem:[%s253_s9] sm:$0xff]  ;;  %v793_v4 = vmov 0.0   ;;  %vm794_vm1 = vmmov 0  }
  0x41   : > { %v296_v1 = vsel %vm295_vm0, %v294_v0, 0.0  ;;  %v300_v2 = vmul.f32 %v294_v0, %v294_v0  ;;  %559 = vmatprep.subr.mxu0 %v793_v4  ;;  %v333_v5 = vld [vmem:[#allocation6 + $0x18] sm:$0xff]  ;;  %v332_v6 = vld [vmem:[#allocation6 + $0x10] sm:$0xff]  ;;  %567 = vmatprep.mubr.msk.f32.mxu0 %vm794_vm1, %v793_v4  ;;  %v331_v7 = vld [vmem:[#allocation6 + $0x8] sm:$0xff]  ;;  %s551_s12 = sshll.u32 %s779_s21, 7  ;;  %s286_s13 = scalar_lea.vmem [#allocation8], %s543_s25 }
  0x42   : > { %297 = vadd.xlane.f32.xlu0 %v296_v1  ;;  %560 = vmatpush3.msra.mxu0 %v333_v5  ;;  %v330_v8 = vld [vmem:[#allocation6] sm:$0xff]  ;;  %v546_v19 = vld [vmem:[%s1017_s1] ss:$0 sm:$0xff]  ;;  %s431_s14 = sshll.u32 %s286_s13, 4  ;;  %s974_s15 = scalar_lea.hbm %s1021_s5, %s551_s12  ;;  %s432_s14 = int_to_ptr.vmem [resolvable:$true] %s431_s14 }
  0x43   : > { %v301_v3 = vsel %vm295_vm0, %v300_v2, 0.0  ;;  %561 = vmatprep.subr.mxu0 %v793_v4  ;;  %v547_v21 = vld [vmem:[%s1018_s2] ss:$0 sm:$0xff]  ;;  %s417_s8 = scalar_lea.sflag [#allocation5], %s941_s16  ;;  %s703_s6 = scalar_lea.vmem %s432_s14, 128 }
  0x44   : > { %562 = vmatpush3.msra.mxu0 %v332_v6  ;;  %v548_v25 = vld [vmem:[%s1020_s4] ss:$0 sm:$0xff]  ;;  %p704_p1 = scmp.ne.s32.totalorder %s432_s14, %s703_s6  ;;  %s795_s21 = smov [#allocation8]  }
  0x45   : > { %563 = vmatprep.subr.mxu0 %v793_v4  ;;  %s707_s9 = sshll.u32 %s795_s21, 4  ;;  %s708_s9 = int_to_ptr.vmem [resolvable:$false] %s707_s9 }
  0x46   : > { %302 = vadd.xlane.f32.xlu0 %v301_v3  ;;  %564 = vmatpush3.msra.mxu0 %v331_v7  ;;  %p705_p8 = pnand %p704_p1, %p913_p13  ;;  %s709_s25 = scalar_lea.vmem %s708_s9, 256 }
  0x47   : > { %565 = vmatprep.subr.mxu0 %v793_v4  ;;  %p710_p0 = scmp.lt.s32.totalorder %s432_s14, %s708_s9  ;;  %p711_p2 = scmp.lt.s32.totalorder %s709_s25, %s703_s6 }
  0x48   : > { %566 = vmatpush3.msra.mxu0 %v330_v8  ;;  %p706_p10 = pneg %p705_p8 }
  0x49   : > { %p712_p3 = por %p711_p2, %p710_p0 }
  0x4b   : > { %p713_p5 = pnand %p712_p3, %p706_p10 }
  0xcb   : > { %v298_v9 = vpop.xlane.xlu0 %297 }
  0xcc   : > { %v299_v10 = vmul.f32 0.03125, %v298_v9 }
  0xce   : > { %v305_v12 = vmul.f32 %v299_v10, %v299_v10  ;;  %v308_v17 = vsub.f32 %v294_v0, %v299_v10 }
  0xcf   : > { %v303_v11 = vpop.xlane.xlu0 %302 }
  0xd0   : > { %v304_v13 = vmul.f32 0.03125, %v303_v11 }
  0xd2   : > { %v306_v14 = vsub.f32 %v304_v13, %v305_v12 }
  0xd4   : > { %v307_v15 = vmax.f32 %v306_v14, 0.0 }
  0xd6   : > { %v309_v16 = vadd.f32 1e-05, %v307_v15 }
  0xd8   : > { %647 = vrsqrt.f32 %v309_v16 }
  0xe5   : > { %v648_v18 = vpop.eup %647 }
  0xe6   : > { %v311_v20 = vmul.f32 %v648_v18, %v308_v17 }
  0xe8   : > { %v319_v22 = vmul.f32 %v546_v19, %v311_v20 }
  0xea   : > { %v327_v23 = vadd.f32 %v547_v21, %v319_v22 }
  0xec   : > { %328 = vst.msk [vmem:[#allocation2] sm:$0xff] %vm295_vm0, %v327_v23 }
  0xf3   : > { %v329_v24 = vld [vmem:[#allocation2] sm:$0xff] }
  0xf4   : > { %568 = vmatmul.mubr.msk.f32.vlgmr.msra.gmra.mxu0 %vm295_vm0, %v329_v24 }
 0x1b4   : > { %v411_v26 = vpop.f32.mrf.mxu0 }
 0x1b5   : > { %v412_v27 = vadd.f32 %v548_v25, %v411_v26 }
 0x1b6   : > { %v569_v28 = vpop.f32.mrf.mxu0 }
 0x1b7   : > { %415 = vst [vmem:[%s286_s13] sm:$0xff] %v412_v27 }
 0x1b8   : > { %716 = shalt.err (!%p713_p5)
}
 0x1b9   : > { %s717_s3 = scalar_lea.hbm %s974_s15, 128  ;;  %s721_s28 = scalar_lea.hbm %s1021_s5, 256 }
 0x1ba   : > { %p718_p7 = scmp.ne.s32.totalorder %s974_s15, %s717_s3  ;;  %p722_p9 = scmp.lt.s32.totalorder %s974_s15, %s1021_s5 }
 0x1bb   : > { %p723_p11 = scmp.lt.s32.totalorder %s721_s28, %s717_s3 }
 0x1bc   : > { %p719_p6 = pnand %p718_p7, %p913_p13 }
 0x1bd   : > { %p724_p12 = por %p723_p11, %p722_p9 }
 0x1be   : > { %p720_p4 = pneg %p719_p6 }
 0x1c0   : > { %p725_p1 = pnand %p724_p12, %p720_p4 }
 0x1c2   : > { %728 = shalt.err (!%p725_p1)
}
 0x1c3   : > { %576 = dma.vmem_to_hbm [thread:$0]  (%p913_p13), %s432_s14, 128, %s974_s15, %s417_s8  }
 0x1c4 PF: > { %s443_s11 = sand.u32 1, %s767_s18   ;;  %p1037_p8 = scmp.ne.s32.totalorder %s1028_s29, 0 }
 0x1c5   : > { %p1038_p10 = scmp.ge.s32.totalorder %s787_s23, 2  ;;  %s444_s12 = scalar_lea.sflag [#allocation5], %s443_s11 }
 0x1c7   : > { %p587_p0 = pnand %p1038_p10, %p1037_p8 }
 0x1c9   : > { %p588_p2 = pneg %p587_p0 }
 0x1cb   : > { %762 = dma.done.wait (%p588_p2), %s444_s12, 128  }
 0x1cc   : > { %764 = vsyncadd (%p588_p2), %s444_s12, 4294967168  ;;  %s22_s23 = sadd.s32 1, %s787_s23   ;;  %s1039_s17 = sld [smem:[#allocation12_spill]] }
 0x1cd   : > { %p19_p3 = scmp.ge.s32.totalorder %s22_s23, 4   ;;  %s1040_s18 = smov %s771_s19 }
 0x1ce   : > { %s1041_s19 = smov %s775_s20  ;;  %s1042_s20 = smov %s922_s7 }
 0x1cf   : > { %s1043_s21 = smov %s783_s22  ;;  %21 = sbr.rel (!%p19_p3) target bundleno = 9 (0x9), region = 97 }
 0x1d2   : > { %s1044_s22 = smov %s1039_s17 }
 0x1d4   :  { %449 = vsyncpa [#allocation4], 1 }
 0x1d5   :  { %451 = vsyncpa [#allocation4 + $0x1], 1 }
 0x1d6   :  { %452 = vsyncpa [#allocation7], 1 }
 0x1d7   :  { %453 = vsyncpa [#allocation5], 1 }
 0x1d8   :  { %455 = vsyncpa [#allocation5 + $0x1], 1 }

</bundles_post_ra>
